<compile_context>
chip_gen: v6e
topology: v6e:2x2x1
jax: 0.10.0
libtpu: 0.0.40
codegen_flags: <defaults>
</compile_context>

<pallas_src>
import functools

import jax
import jax.numpy as jnp
from jax import lax
from jax.experimental import pallas as pl
from jax.experimental.pallas import tpu as pltpu


_TARGET_BLOCK_BYTES = 8 * 1024 * 1024   # ~8 MiB input blocks (double-buffered)
_VMEM_LIMIT_BYTES = 32 * 1024 * 1024    # room for 2 x 8 MiB + output/scratch
_MIN_SPATIAL_BYTES = 512                # below this, lane padding / tiny DMAs dominate


def _round_down8(n):
    return (n // 8) * 8


def _gap_kernel(x_ref, o_ref, *, inv_hw):
    # x_ref: (TR, H*W) tile of fused (N*C) rows; o_ref: (TR, 1).
    # Accumulate in f32 without materializing a full f32 copy of the tile.
    s = jnp.sum(x_ref[...], axis=-1, keepdims=True, dtype=jnp.float32)
    o_ref[...] = (s * inv_hw).astype(o_ref.dtype)


def _gap_split_kernel(x_ref, o_ref, acc_ref, *, inv_hw, hw, tc):
    # Reduction over H*W split across grid axis 1 ("arbitrary", last).
    # x_ref: (TR, TC) column slab; acc_ref: (TR, 1) f32 running sum.
    k = pl.program_id(1)

    @pl.when(k == 0)
    def _():
        acc_ref[...] = jnp.zeros_like(acc_ref)

    x = x_ref[...]
    if hw % tc != 0:
        # Mask out-of-range (padded) columns of the last column tile.
        col0 = k * tc
        lane = lax.broadcasted_iota(jnp.int32, x.shape, dimension=1)
        x = jnp.where(col0 + lane < hw, x, jnp.zeros_like(x))
    acc_ref[...] += jnp.sum(x, axis=-1, keepdims=True, dtype=jnp.float32)

    @pl.when(k == pl.num_programs(1) - 1)
    def _():
        o_ref[...] = (acc_ref[...] * inv_hw).astype(o_ref.dtype)


def _choose_tiles(rows, hw, itemsize, target_bytes):
    """Pick (tr, tc): ~target_bytes per input block, (8, 128)-friendly tiles."""
    # Column tile: keep the full H*W extent unless even 8 rows of it would
    # exceed the budget; then split on a 128-lane multiple.
    max_cols = max(128, target_bytes // (8 * itemsize))
    if hw <= max_cols:
        tc = hw
    else:
        tc = (max_cols // 128) * 128

    # Row tile: as many fused rows as fit the budget for one (tr, tc) block.
    tr = max(1, target_bytes // (tc * itemsize))
    tr = min(tr, rows)
    if rows >= 8:
        tr = max(8, _round_down8(tr))

    # Guarantee >= 2 grid steps over rows when there's enough work, so the
    # "parallel" axis shards across v7x's two TensorCores and the pipeline
    # has steps to double-buffer.
    if rows >= 16:
        tr = min(tr, max(8, _round_down8(rows // 2)))
    return int(tr), int(tc)


def global_average_pooling_2d(x, *, _target_block_bytes=None):
    """x: (N, C, H, W) -> (N, C), mean over H and W."""
    N, C, H, W = x.shape
    rows = N * C
    hw = H * W
    itemsize = x.dtype.itemsize
    target_bytes = (_TARGET_BLOCK_BYTES if _target_block_bytes is None
                    else _target_block_bytes)

    if hw * itemsize < _MIN_SPATIAL_BYTES:
        # ResNet-style tiny final pools (e.g. 7x7): per-row lane padding and
        # sub-512 B DMA segments make the Pallas stream slower than XLA here.
        return jnp.mean(x, axis=(-1, -2))

    # Free reshape on contiguous NCHW: row r = (n, c), columns = spatial.
    x2 = x.reshape(rows, hw)

    tr, tc = _choose_tiles(rows, hw, itemsize, target_bytes)
    num_row_tiles = pl.cdiv(rows, tr)
    num_col_tiles = pl.cdiv(hw, tc)

    inv_hw = 1.0 / float(hw)
    cost = pl.CostEstimate(
        flops=rows * hw,
        bytes_accessed=rows * hw * itemsize + rows * itemsize,
        transcendentals=0,
    )
    out_shape = jax.ShapeDtypeStruct((rows, 1), x.dtype)

    if num_col_tiles == 1:
        # Streaming path: one block per row tile, full H*W on lanes.
        out = pl.pallas_call(
            functools.partial(_gap_kernel, inv_hw=inv_hw),
            out_shape=out_shape,
            grid_spec=pl.GridSpec(
                grid=(num_row_tiles,),
                in_specs=[pl.BlockSpec((tr, hw), lambda i: (i, 0))],
                out_specs=pl.BlockSpec((tr, 1), lambda i: (i, 0)),
            ),
            compiler_params=pltpu.CompilerParams(
                dimension_semantics=("parallel",),
                vmem_limit_bytes=_VMEM_LIMIT_BYTES,
            ),
            cost_estimate=cost,
        )(x2)
    else:
        # Huge-H*W path: split the reduction axis, accumulate in f32 scratch.
        out = pl.pallas_call(
            functools.partial(_gap_split_kernel, inv_hw=inv_hw, hw=hw, tc=tc),
            out_shape=out_shape,
            grid_spec=pltpu.PrefetchScalarGridSpec(
                num_scalar_prefetch=0,
                grid=(num_row_tiles, num_col_tiles),
                in_specs=[pl.BlockSpec((tr, tc), lambda i, k: (i, k))],
                out_specs=pl.BlockSpec((tr, 1), lambda i, k: (i, 0)),
                scratch_shapes=[pltpu.VMEM((tr, 1), jnp.float32)],
            ),
            compiler_params=pltpu.CompilerParams(
                dimension_semantics=("parallel", "arbitrary"),
                vmem_limit_bytes=_VMEM_LIMIT_BYTES,
            ),
            cost_estimate=cost,
        )(x2)

    return out.reshape(N, C)


if __name__ == "__main__":
    key = jax.random.PRNGKey(0)

    # Main check: single-block streaming path.
    x = jax.random.normal(key, (2, 4, 16, 16), dtype=jnp.float32)
    out = jax.block_until_ready(global_average_pooling_2d(x))
    ref = jnp.mean(x, axis=(-1, -2))
    assert out.shape == (2, 4), out.shape
    assert jnp.allclose(out, ref, atol=1e-5, rtol=1e-5), "mismatch vs reference"

    # Secondary check: force the split-reduction (huge-H*W) path, including
    # the masked tail-column case, by shrinking the per-block byte budget.
    key2 = jax.random.PRNGKey(0)
    x2 = jax.random.normal(key2, (2, 3, 10, 52), dtype=jnp.float32)  # hw=520, 520 % 128 != 0
    out2 = jax.block_until_ready(
        global_average_pooling_2d(x2, _target_block_bytes=4096))
    ref2 = jnp.mean(x2, axis=(-1, -2))
    assert out2.shape == (2, 3), out2.shape
    assert jnp.allclose(out2, ref2, atol=1e-5, rtol=1e-5), "split-path mismatch"

    print("KERNEL_OK")
</pallas_src>

<mosaic_0001>
module attributes {stable_mosaic.version = 11 : i64} {
  func.func @_gap_kernel(%arg0: i32, %arg1: memref<8x256xf32, #tpu.memory_space<vmem>>, %arg2: memref<8x1xf32, #tpu.memory_space<vmem>>) attributes {dimension_semantics = [#tpu.dimension_semantics<parallel>], iteration_bounds = array<i64: 1>, scalar_prefetch = 0 : i64, scratch_operands = 0 : i64, tpu.core_type = #tpu.core_type<tc>, window_params = [{transform_indices = @transform_0, window_bounds = array<i64: 8, 256>}, {transform_indices = @transform_1, window_bounds = array<i64: 8, 1>}]} {
    %c0 = arith.constant 0 : index
    %c0_0 = arith.constant 0 : index
    %0 = vector.load %arg1[%c0, %c0_0] : memref<8x256xf32, #tpu.memory_space<vmem>>, vector<8x256xf32>
    %cst = arith.constant dense<0.000000e+00> : vector<8xf32>
    %1 = vector.multi_reduction <add>, %0, %cst [1] : vector<8x256xf32> to vector<8xf32>
    %2 = vector.shape_cast %1 : vector<8xf32> to vector<8x1xf32>
    %cst_1 = arith.constant 3.906250e-03 : f32
    %3 = vector.broadcast %cst_1 : f32 to vector<8x1xf32>
    %4 = arith.mulf %2, %3 : vector<8x1xf32>
    %c0_2 = arith.constant 0 : index
    %c0_3 = arith.constant 0 : index
    %5 = vector.load %arg2[%c0_2, %c0_3] : memref<8x1xf32, #tpu.memory_space<vmem>>, vector<8x1xf32>
    tpu.vector_store %arg2[%c0_2, %c0_3], %4 {strides = array<i32>} : memref<8x1xf32, #tpu.memory_space<vmem>>, vector<8x1xf32>,
    return
  }
  func.func @transform_0(%arg0: i32) -> (i32, i32) {
    %c0_i32 = arith.constant 0 : i32
    %c0_i32_0 = arith.constant 0 : i32
    return %arg0, %c0_i32 : i32, i32
  }
  func.func @transform_1(%arg0: i32) -> (i32, i32) {
    %c0_i32 = arith.constant 0 : i32
    %c0_i32_0 = arith.constant 0 : i32
    return %arg0, %c0_i32 : i32, i32
  }
}

</mosaic_0001>

<bundles_post_ra>
// kernel: tpu_custom_call.1
= control target key start
LH: loop header
LB: loop body
LE: loop exit
PB: predicated region body
PF: predicated region fallthrough
CT: control target
= control target key end

     0   :  { %6 = vsyncpa [#allocation3], 0  ;;  %s56_s6 = smov [#allocation2]   ;;  %s73_s0 = inlined_call_operand.hbm [shape: f32[8,256], index: 0, kind: input, shape index: {}]   ;;  %s74_s1 = inlined_call_operand.vmem [shape: f32[8,1], index: 1, kind: output, shape index: {}]  }
   0x1   :  { %s13_s7 = sshll.u32 %s56_s6, 4  ;;  %s14_s7 = int_to_ptr.vmem [resolvable:$true] %s13_s7 }
   0x2   :  { %s42_s8 = scalar_lea.vmem %s14_s7, 256  ;;  %p47_p1 = scmp.lt.s32.totalorder %s14_s7, %s14_s7 }
   0x3   :  { %p43_p0 = scmp.ne.s32.totalorder %s14_s7, %s42_s8  ;;  %p48_p2 = scmp.lt.s32.totalorder %s42_s8, %s42_s8 }
   0x5   :  { %p49_p3 = por %p48_p2, %p47_p1 }
   0x7   :  { %p50_p4 = pnand %p49_p3, %p43_p0 }
   0x9   :  { %53 = shalt.err (!%p50_p4)
}
   0xa   :  { %16 = dma.hbm_to_vmem [thread:$0]  %s73_s0, 256, %s14_s7, [#allocation3]  }
   0xb   :  { %54 = dma.done.wait [#allocation3], 256  }
   0xc   :  { %55 = vsyncadd [#allocation3], 4294967040  ;;  %v20_v0 = vld [vmem:[#allocation2] sm:$0xff]  ;;  %v21_v1 = vld [vmem:[#allocation2 + $0x8] sm:$0xff]  ;;  %vm26_vm0 = vcmask 7168  }
   0xd   :  { %v22_v2 = vadd.f32 %v21_v1, %v20_v0 }
   0xf   :  { %23 = vadd.xlane.f32.xlu0 %v22_v2 }
  0x98   :  { %v24_v3 = vpop.xlane.xlu0 %23 }
  0x99   :  { %v25_v4 = vmul.f32 0.00390625, %v24_v3 }
  0x9b   :  { %27 = vst.msk [vmem:[%s74_s1] sm:$0xff] %vm26_vm0, %v25_v4 }
  0x9c   :  { %32 = vsyncpa [#allocation3], 1 }

</bundles_post_ra>
